<compile_context>
chip_gen: v7x
topology: tpu7x:2x2x1
jax: 0.10.0
libtpu: 0.0.40
codegen_flags: <defaults>
</compile_context>

<pallas_src>
import jax
import jax.numpy as jnp
from jax.experimental import pallas as pl
from jax.experimental.pallas import tpu as pltpu


def _symm_decoder_kernel(fr_ref, fx_ref, w1_ref, b1_ref, w2_ref, b2_ref, o_ref):
    """Fused symm fusion -> 1x1 conv -> ReLU -> 1x1 conv on a (C, T) spatial tile."""
    fr = fr_ref[0].astype(jnp.float32)           # (C, T)
    fx = fx_ref[0].astype(jnp.float32)           # (C, T)

    # symmetric combination, stacked along sublanes -> single MXU contraction of 2C
    sd = jnp.concatenate([fr + fx, jnp.abs(fr - fx)], axis=0)     # (2C, T)

    # layer 1: 1x1 conv over concat([s, d]); weights pre-laid-out as (c_mid, 2C)
    h = jnp.dot(w1_ref[...], sd, preferred_element_type=jnp.float32) + b1_ref[...]
    h = jnp.maximum(h, 0.0)                       # ReLU, (c_mid, T)

    # layer 2 (decoder 1x1 conv): (c_out, c_mid) @ (c_mid, T)
    out = jnp.dot(w2_ref[...], h, preferred_element_type=jnp.float32) + b2_ref[...]
    o_ref[0] = out.astype(o_ref.dtype)            # lane-dense (c_out, T) store


def main_decoder_position(f_ref, f, params, *,
                          hw_tile_max=64 * 1024,
                          vmem_budget_bytes=40 * 1024 * 1024):
    """f_ref, f: NCHW arrays of identical shape [B, C, H, W].
    Returns the decoded position map, NCHW [B, C_out, H, W]."""
    B, C, H, W = f_ref.shape
    w1s, w1d, b1, w2, b2 = params
    c_mid = w1s.shape[1]
    c_out = w2.shape[1]

    # spatial-minor layout: contiguous reshape only, no transpose passes
    hw = H * W
    fr3 = f_ref.reshape(B, C, hw)
    fx3 = f.reshape(B, C, hw)

    # --- spatial tile sizing -------------------------------------------------
    lane = 128
    # user cap, rounded down to a multiple of 128 (robustness: Mosaic requires it)
    tile_max = max(lane, (int(hw_tile_max) // lane) * lane)

    # per-lane VMEM bytes at tile width T:
    #   double-buffered inputs (2 arrays x 2 bufs x C), double-buffered output,
    #   plus in-kernel f32 intermediates: fr/fx casts (2C), sd (2C), h (c_mid), out (c_out)
    in_b = jnp.dtype(fr3.dtype).itemsize
    per_lane_vmem = (2 * 2 * C * in_b) + (2 * c_out * 4) \
        + (2 * C + 2 * C + c_mid + c_out) * 4
    vmem_cap = max(lane, (int(vmem_budget_bytes) // per_lane_vmem // lane) * lane)

    hw_tile = min(tile_max, vmem_cap)
    if B == 1 and hw > 2 * lane:
        # keep >= 2 grid steps so both v7x TensorCores get work when batch == 1
        hw_tile = min(hw_tile, max(lane, (pl.cdiv(hw, 2) // lane) * lane))
    if hw <= hw_tile:
        # whole spatial dim in one block (equals full array dim -> no 128 constraint,
        # and no ragged last block at all)
        hw_tile = hw
    n_hw_tiles = pl.cdiv(hw, hw_tile)
    # NOTE: no jnp.pad / output slice -- Pallas masks writes of the ragged last block;
    # every op is lane-local so garbage lanes in clipped input reads never leak.

    # --- one-off weight re-layout (cache outside this wrapper if params are static) ---
    w1_cat = jnp.concatenate(
        [jnp.asarray(w1s).T, jnp.asarray(w1d).T], axis=1).astype(jnp.float32)  # (c_mid, 2C)
    b1_t = jnp.asarray(b1).reshape(c_mid, 1).astype(jnp.float32)
    w2_t = jnp.asarray(w2).T.astype(jnp.float32)                               # (c_out, c_mid)
    b2_t = jnp.asarray(b2).reshape(c_out, 1).astype(jnp.float32)

    grid = (B, n_hw_tiles)

    # advisory cost hint (mem-bound custom call)
    flops = int(2 * B * hw * (2 * C * c_mid + c_mid * c_out))
    weight_bytes = 4 * (w1_cat.size + b1_t.size + w2_t.size + b2_t.size)
    bytes_accessed = int(in_b * B * hw * 2 * C + 4 * B * hw * c_out + weight_bytes)

    # VMEM limit from the actual per-step footprint (+25% / +2 MiB slack),
    # clamped to 48 MiB so it fits v7x's 64 MiB VMEM with headroom and lifts
    # v5e's 16 MiB scoped default.
    step_vmem = per_lane_vmem * hw_tile + weight_bytes
    vmem_limit = int(min(48 * 1024 * 1024,
                         max(16 * 1024 * 1024, step_vmem * 5 // 4 + (2 << 20))))

    out3 = pl.pallas_call(
        _symm_decoder_kernel,
        out_shape=jax.ShapeDtypeStruct((B, c_out, hw), jnp.float32),
        grid_spec=pltpu.PrefetchScalarGridSpec(
            num_scalar_prefetch=0,
            grid=grid,
            in_specs=[
                pl.BlockSpec((1, C, hw_tile), lambda b, t: (b, 0, t)),     # f_ref tile
                pl.BlockSpec((1, C, hw_tile), lambda b, t: (b, 0, t)),     # f tile
                pl.BlockSpec((c_mid, 2 * C), lambda b, t: (0, 0)),         # W1 [sum|diff], resident
                pl.BlockSpec((c_mid, 1), lambda b, t: (0, 0)),             # b1, resident
                pl.BlockSpec((c_out, c_mid), lambda b, t: (0, 0)),         # W2, resident
                pl.BlockSpec((c_out, 1), lambda b, t: (0, 0)),             # b2, resident
            ],
            out_specs=pl.BlockSpec((1, c_out, hw_tile), lambda b, t: (b, 0, t)),
        ),
        compiler_params=pltpu.CompilerParams(
            dimension_semantics=("parallel", "parallel"),
            vmem_limit_bytes=vmem_limit),
        cost_estimate=pl.CostEstimate(
            flops=flops, transcendentals=0, bytes_accessed=bytes_accessed),
    )(fr3, fx3, w1_cat, b1_t, w2_t, b2_t)

    # (B, C_out, H*W) -> NCHW (contiguous reshape, no transpose)
    return out3.reshape(B, c_out, H, W)


def _reference(f_ref, f, params):
    """Pure-JAX reference of the same forward pass (for correctness check)."""
    w1s, w1d, b1, w2, b2 = params
    s = f_ref + f
    d = jnp.abs(f_ref - f)
    h = (jnp.einsum('bchw,cm->bmhw', s, w1s)
         + jnp.einsum('bchw,cm->bmhw', d, w1d)
         + b1.reshape(1, -1, 1, 1))
    h = jnp.maximum(h, 0.0)
    out = jnp.einsum('bmhw,mo->bohw', h, w2) + b2.reshape(1, -1, 1, 1)
    return out


def _init_params(key, c_in, c_mid, c_out):
    k1, k2, k3 = jax.random.split(key, 3)
    scale1 = 1.0 / jnp.sqrt(2.0 * c_in)
    scale2 = 1.0 / jnp.sqrt(1.0 * c_mid)
    w1s = jax.random.normal(k1, (c_in, c_mid), jnp.float32) * scale1
    w1d = jax.random.normal(k2, (c_in, c_mid), jnp.float32) * scale1
    b1 = jnp.zeros((1, c_mid), jnp.float32)
    w2 = jax.random.normal(k3, (c_mid, c_out), jnp.float32) * scale2
    b2 = jnp.zeros((1, c_out), jnp.float32)
    return (w1s, w1d, b1, w2, b2)


if __name__ == "__main__":
    key = jax.random.PRNGKey(0)
    kf1, kf2, kp = jax.random.split(key, 3)

    B, C, H, W = 2, 4, 16, 16   # small NCHW feature maps
    C_MID, C_OUT = 32, 3        # hidden width / position channels

    f_ref = jax.random.normal(kf1, (B, C, H, W), jnp.float32)
    f = jax.random.normal(kf2, (B, C, H, W), jnp.float32)
    params = _init_params(kp, C, C_MID, C_OUT)

    out = main_decoder_position(f_ref, f, params)
    out = jax.block_until_ready(out)

    ref = jax.block_until_ready(_reference(f_ref, f, params))
    assert out.shape == (B, C_OUT, H, W)
    assert jnp.allclose(out, ref, atol=1e-4, rtol=1e-4)

    # also exercise the ragged-tile path (hw not a multiple of the tile) to make
    # sure the pad-free masked-store handling is correct
    out_small_tile = jax.block_until_ready(
        main_decoder_position(f_ref, f, params, hw_tile_max=128))
    assert jnp.allclose(out_small_tile, ref, atol=1e-4, rtol=1e-4)

    print("KERNEL_OK")
</pallas_src>

<mosaic_0001>
module attributes {stable_mosaic.version = 11 : i64} {
  func.func @_symm_decoder_kernel(%arg0: i32, %arg1: i32, %arg2: memref<1x4x256xf32, #tpu.memory_space<vmem>>, %arg3: memref<1x4x256xf32, #tpu.memory_space<vmem>>, %arg4: memref<32x8xf32, #tpu.memory_space<vmem>>, %arg5: memref<32x1xf32, #tpu.memory_space<vmem>>, %arg6: memref<3x32xf32, #tpu.memory_space<vmem>>, %arg7: memref<3x1xf32, #tpu.memory_space<vmem>>, %arg8: memref<1x3x256xf32, #tpu.memory_space<vmem>>) attributes {dimension_semantics = [#tpu.dimension_semantics<parallel>, #tpu.dimension_semantics<parallel>], iteration_bounds = array<i64: 2, 1>, scalar_prefetch = 0 : i64, scratch_operands = 0 : i64, tpu.core_type = #tpu.core_type<tc>, window_params = [{transform_indices = @transform_0, window_bounds = array<i64: 1, 4, 256>}, {transform_indices = @transform_1, window_bounds = array<i64: 1, 4, 256>}, {pipeline_mode = #tpu.pipeline_mode<synchronous>, transform_indices = @transform_2, window_bounds = array<i64: 32, 8>}, {pipeline_mode = #tpu.pipeline_mode<synchronous>, transform_indices = @transform_3, window_bounds = array<i64: 32, 1>}, {pipeline_mode = #tpu.pipeline_mode<synchronous>, transform_indices = @transform_4, window_bounds = array<i64: 3, 32>}, {pipeline_mode = #tpu.pipeline_mode<synchronous>, transform_indices = @transform_5, window_bounds = array<i64: 3, 1>}, {transform_indices = @transform_6, window_bounds = array<i64: 1, 3, 256>}]} {
    %c0 = arith.constant 0 : index
    %c0_0 = arith.constant 0 : index
    %c0_1 = arith.constant 0 : index
    %0 = vector.load %arg2[%c0, %c0_0, %c0_1] : memref<1x4x256xf32, #tpu.memory_space<vmem>>, vector<1x4x256xf32>
    %1 = vector.shape_cast %0 : vector<1x4x256xf32> to vector<4x256xf32>
    %c0_2 = arith.constant 0 : index
    %c0_3 = arith.constant 0 : index
    %c0_4 = arith.constant 0 : index
    %2 = vector.load %arg3[%c0_2, %c0_3, %c0_4] : memref<1x4x256xf32, #tpu.memory_space<vmem>>, vector<1x4x256xf32>
    %3 = vector.shape_cast %2 : vector<1x4x256xf32> to vector<4x256xf32>
    %4 = arith.addf %1, %3 : vector<4x256xf32>
    %5 = arith.subf %1, %3 : vector<4x256xf32>
    %6 = math.absf %5 : vector<4x256xf32>
    %7 = tpu.concatenate %4, %6 in 0 : vector<4x256xf32>, vector<4x256xf32> -> vector<8x256xf32>
    %c0_5 = arith.constant 0 : index
    %c0_6 = arith.constant 0 : index
    %8 = vector.load %arg4[%c0_5, %c0_6] : memref<32x8xf32, #tpu.memory_space<vmem>>, vector<32x8xf32>
    %cst = arith.constant dense<0.000000e+00> : vector<32x256xf32>
    %9 = tpu.matmul %8, %7, %cst {dimension_numbers = #tpu.dot_dimension_numbers<[1], [0], [0], [1], [0, 0, 1, 1], [], []>} : vector<32x8xf32>, vector<8x256xf32>, vector<32x256xf32> -> vector<32x256xf32>
    %c0_7 = arith.constant 0 : index
    %c0_8 = arith.constant 0 : index
    %10 = vector.load %arg5[%c0_7, %c0_8] : memref<32x1xf32, #tpu.memory_space<vmem>>, vector<32x1xf32>
    %11 = vector.broadcast %10 : vector<32x1xf32> to vector<32x256xf32>
    %12 = arith.addf %9, %11 : vector<32x256xf32>
    %cst_9 = arith.constant 0.000000e+00 : f32
    %13 = vector.broadcast %cst_9 : f32 to vector<32x256xf32>
    %14 = arith.maximumf %12, %13 : vector<32x256xf32>
    %c0_10 = arith.constant 0 : index
    %c0_11 = arith.constant 0 : index
    %15 = vector.load %arg6[%c0_10, %c0_11] : memref<3x32xf32, #tpu.memory_space<vmem>>, vector<3x32xf32>
    %cst_12 = arith.constant dense<0.000000e+00> : vector<3x256xf32>
    %16 = tpu.matmul %15, %14, %cst_12 {dimension_numbers = #tpu.dot_dimension_numbers<[1], [0], [0], [1], [0, 0, 1, 1], [], []>} : vector<3x32xf32>, vector<32x256xf32>, vector<3x256xf32> -> vector<3x256xf32>
    %c0_13 = arith.constant 0 : index
    %c0_14 = arith.constant 0 : index
    %17 = vector.load %arg7[%c0_13, %c0_14] : memref<3x1xf32, #tpu.memory_space<vmem>>, vector<3x1xf32>
    %18 = vector.broadcast %17 : vector<3x1xf32> to vector<3x256xf32>
    %19 = arith.addf %16, %18 : vector<3x256xf32>
    %c0_15 = arith.constant 0 : index
    %c0_16 = arith.constant 0 : index
    %c0_17 = arith.constant 0 : index
    %20 = vector.load %arg8[%c0_15, %c0_16, %c0_17] : memref<1x3x256xf32, #tpu.memory_space<vmem>>, vector<1x3x256xf32>
    %21 = vector.shape_cast %20 : vector<1x3x256xf32> to vector<3x256xf32>
    %22 = vector.shape_cast %19 : vector<3x256xf32> to vector<1x3x256xf32>
    tpu.vector_store %arg8[%c0_15, %c0_16, %c0_17], %22 {strides = array<i32>} : memref<1x3x256xf32, #tpu.memory_space<vmem>>, vector<1x3x256xf32>,
    return
  }
  func.func @transform_0(%arg0: i32, %arg1: i32) -> (i32, i32, i32) {
    %c0_i32 = arith.constant 0 : i32
    %c0_i32_0 = arith.constant 0 : i32
    return %arg0, %c0_i32, %arg1 : i32, i32, i32
  }
  func.func @transform_1(%arg0: i32, %arg1: i32) -> (i32, i32, i32) {
    %c0_i32 = arith.constant 0 : i32
    %c0_i32_0 = arith.constant 0 : i32
    return %arg0, %c0_i32, %arg1 : i32, i32, i32
  }
  func.func @transform_2(%arg0: i32, %arg1: i32) -> (i32, i32) {
    %c0_i32 = arith.constant 0 : i32
    %c0_i32_0 = arith.constant 0 : i32
    %c0_i32_1 = arith.constant 0 : i32
    return %c0_i32, %c0_i32_0 : i32, i32
  }
  func.func @transform_3(%arg0: i32, %arg1: i32) -> (i32, i32) {
    %c0_i32 = arith.constant 0 : i32
    %c0_i32_0 = arith.constant 0 : i32
    %c0_i32_1 = arith.constant 0 : i32
    return %c0_i32, %c0_i32_0 : i32, i32
  }
  func.func @transform_4(%arg0: i32, %arg1: i32) -> (i32, i32) {
    %c0_i32 = arith.constant 0 : i32
    %c0_i32_0 = arith.constant 0 : i32
    %c0_i32_1 = arith.constant 0 : i32
    return %c0_i32, %c0_i32_0 : i32, i32
  }
  func.func @transform_5(%arg0: i32, %arg1: i32) -> (i32, i32) {
    %c0_i32 = arith.constant 0 : i32
    %c0_i32_0 = arith.constant 0 : i32
    %c0_i32_1 = arith.constant 0 : i32
    return %c0_i32, %c0_i32_0 : i32, i32
  }
  func.func @transform_6(%arg0: i32, %arg1: i32) -> (i32, i32, i32) {
    %c0_i32 = arith.constant 0 : i32
    %c0_i32_0 = arith.constant 0 : i32
    return %arg0, %c0_i32, %arg1 : i32, i32, i32
  }
}

</mosaic_0001>

<bundles_post_ra>
// kernel: tpu_custom_call.1
= control target key start
LH: loop header
LB: loop body
LE: loop exit
PB: predicated region body
PF: predicated region fallthrough
CT: control target
= control target key end

     0   :  { %s789_s21 = smov 0   ;;  %s791_s22 = smov 0   ;;  %s860_s0 = inlined_call_operand.vmem [shape: f32[2,4,256], index: 0, kind: input, shape index: {}]   ;;  %s861_s1 = inlined_call_operand.vmem [shape: f32[2,4,256], index: 1, kind: input, shape index: {}]   ;;  %s862_s2 = inlined_call_operand.vmem [shape: f32[32,8], index: 2, kind: input, shape index: {}]   ;;  %s863_s3 = inlined_call_operand.vmem [shape: f32[32,1], index: 3, kind: input, shape index: {}]   ;;  %s864_s4 = inlined_call_operand.vmem [shape: f32[3,32], index: 4, kind: input, shape index: {}]   ;;  %s865_s5 = inlined_call_operand.vmem [shape: f32[3,1], index: 5, kind: input, shape index: {}]   ;;  %s866_s6 = inlined_call_operand.vmem [shape: f32[2,3,256], index: 6, kind: output, shape index: {}]  }
   0x1   :  { %s793_s23 = smov 0  }
   0x2 LB: > { %s28_s24 = sadd.s32 1, %s746_s22  ;;  %p675_p0 = scmp.ge.s32.totalorder %s750_s23, 1  ;;  %s750_s23 = sphi %s793_s23, %s16_s23   ;;  %s746_s22 = sphi %s791_s22, %s868_s22   ;;  %s742_s21 = sphi %s789_s21, %s867_s21  }
   0x3   : > { %p30_p1 = scmp.ge.s32.totalorder %s28_s24, 2  ;;  %p250_p2 = scmp.lt.s32.totalorder %s750_s23, 3 }
   0x5   : > { %s870_s24 = smov (%p30_p1, %s28_s24), 0  ;;  %p251_p3 = pnand %p675_p0, %p250_p2 }
   0x6   : > { %p298_p4 = scmp.lt.s32.totalorder (!%p251_p3), %s742_s21, 1  ;;  %v752_v0 = vmov (!%p251_p3), 0.0   ;;  %v345_v1 = vld [vmem:[%s863_s3] sm:$0xff] (!%p251_p3)  ;;  %v753_v2 = vmov (!%p251_p3), 0   ;;  %v347_v3 = vld [vmem:[%s863_s3 + $0x10] sm:$0xff] (!%p251_p3)  ;;  %v346_v4 = vld [vmem:[%s863_s3 + $0x8] sm:$0xff] (!%p251_p3) }
   0x7   : > { %254 = sbr.rel (%p251_p3) target bundleno = 480 (0x1e0), region = 44  ;;  %446 = vmatprep.mubr.f32.mxu0 (!%p251_p3), %v752_v0  ;;  %554 = vmatprep.mubr.f32.mxu1 (!%p251_p3), %v752_v0  ;;  %v348_v5 = vld [vmem:[%s863_s3 + $0x18] sm:$0xff] (!%p251_p3)  ;;  %vm338_vm0 = vcmask (!%p251_p3), 1043456   ;;  %v480_v10 = vld [vmem:[%s865_s5] sm:$0x7] (!%p251_p3)  ;;  %vm369_vm1 = vcmask (!%p251_p3), 64512  }
   0x8   : > { %726 = vset.pattern.permute.xlu0 (!%p251_p3), %v753_v2  ;;  %727 = vset.pattern.permute.xlu1 (!%p251_p3), %v753_v2  ;;  %v341_v15 = vld [vmem:[%s862_s2] sm:$0xff] (!%p251_p3)  ;;  %v342_v17 = vld [vmem:[%s862_s2 + $0x8] sm:$0xff] (!%p251_p3)  ;;  %v343_v18 = vld [vmem:[%s862_s2 + $0x10] sm:$0xff] (!%p251_p3)  ;;  %vm486_vm2 = vcmask (!%p251_p3), 261120  }
   0x9   : > { %351 = vperm.xlu0 (!%p251_p3), %726, %v345_v1   ;;  %361 = vperm.xlu1 (!%p251_p3), %727, %v347_v3   ;;  %v344_v19 = vld [vmem:[%s862_s2 + $0x18] sm:$0xff] (!%p251_p3)  ;;  %v479_v52 = vld [vmem:[%s864_s4] sm:$0x7] (!%p251_p3) }
   0xd   : > { %356 = vperm.xlu0 (!%p251_p3), %726, %v346_v4   ;;  %366 = vperm.xlu1 (!%p251_p3), %727, %v348_v5  }
   0xe   : > { %s872_s21 = smov (!%p298_p4, %s742_s21), 1 }
   0xf   : > { %s813_s29 = sshll.u32 %s872_s21, 3 }
  0x10   : > { %s305_s12 = scalar_lea.vmem %s860_s0, %s813_s29  ;;  %s315_s15 = scalar_lea.vmem %s861_s1, %s813_s29 }
  0x11   : > { %v327_v6 = vld [vmem:[%s305_s12] sm:$0xff]  ;;  %483 = vperm.xlu0 %726, %v480_v10   ;;  %s325_s10 = scalar_lea.vmem %s866_s6, %s813_s29 }
  0x12   : > { %v328_v7 = vld [vmem:[%s315_s15] sm:$0xff] }
  0x13   : > { %v329_v8 = vadd.f32 %v328_v7, %v327_v6  ;;  %v330_v9 = vsub.f32 %v327_v6, %v328_v7 }
  0x15   : > { %v331_v11 = vand.u32 2147483647, %v330_v9  ;;  %v333_v12 = vcombine.high %v329_v8, %v329_v8 }
  0x17   : > { %v340_v13 = vsel %vm338_vm0, %v333_v12, %v331_v11  ;;  %v336_v14 = vcombine.low %v331_v11, %v331_v11 }
  0x18   : > { %382 = vmatprep.subr.mxu0 %v340_v13 }
  0x19   : > { %v339_v16 = vsel %vm338_vm0, %v329_v8, %v336_v14 }
  0x1a   : > { %383 = vmatpush1.msra.mxu0 %v339_v16 }
  0x1b   : > { %682 = vmatmul.mubr.msk.f32.vlgmr.msra.gmra.mrb[0].mxu0 %vm369_vm1, %v341_v15 }
  0x1c   : > { %452 = vmatprep.mubr.f32.mxu0 %v752_v0 }
  0x1f   : > { %683 = vmatmul.mubr.msk.f32.gmra.mrb[2].mxu0 %vm369_vm1, %v342_v17 }
  0x20   : > { %458 = vmatprep.mubr.f32.mxu0 %v752_v0 }
  0x23   : > { %684 = vmatmul.mubr.msk.f32.gmra.mrb[4].mxu0 %vm369_vm1, %v343_v18 }
  0x24   : > { %464 = vmatprep.mubr.f32.mxu0 %v752_v0 }
  0x27   : > { %685 = vmatmul.mubr.msk.f32.gmra.mrb[6].mxu0 %vm369_vm1, %v344_v19 }
  0x88   : > { %v352_v20 = vpop.permute.xlu0 %351  ;;  %v362_v29 = vpop.permute.xlu1 %361 }
  0x8c   : > { %v357_v24 = vpop.permute.xlu0 %356  ;;  %v367_v40 = vpop.permute.xlu1 %366 }
  0x90   : > { %v484_v53 = vpop.permute.xlu0 %483 }
  0xee   : > { %v448_v21 = vpop.f32.mrb[0].mxu0 }
  0xef   : > { %v450_v22 = vpop.f32.mrb[1].mxu0  ;;  %v449_v23 = vadd.f32 %v448_v21, %v352_v20 }
  0xf0   : > { %v451_v25 = vadd.f32 %v450_v22, %v352_v20 }
  0xf1   : > { %v471_v31 = vmax.f32 %v449_v23, 0.0 }
  0xf2   : > { %v454_v26 = vpop.f32.mrb[2].mxu0  ;;  %v472_v33 = vmax.f32 %v451_v25, 0.0 }
  0xf3   : > { %v455_v27 = vadd.f32 %v454_v26, %v357_v24  ;;  %v456_v28 = vpop.f32.mrb[3].mxu0 }
  0xf4   : > { %v457_v30 = vadd.f32 %v456_v28, %v357_v24 }
  0xf5   : > { %v473_v32 = vmax.f32 %v455_v27, 0.0 }
  0xf6   : > { %v474_v34 = vmax.f32 %v457_v30, 0.0  ;;  %v460_v35 = vpop.f32.mrb[4].mxu0 }
  0xf7   : > { %v462_v36 = vpop.f32.mrb[5].mxu0  ;;  %v694_v37 = vpack.c.bf16 %v473_v32, %v471_v31  ;;  %v461_v39 = vadd.f32 %v460_v35, %v362_v29 }
  0xf8   : > { %v692_v38 = vpack.c.bf16 %v474_v34, %v472_v33  ;;  %v463_v41 = vadd.f32 %v462_v36, %v362_v29 }
  0xf9   : > { %v475_v46 = vmax.f32 %v461_v39, 0.0 }
  0xfa   : > { %v466_v42 = vpop.f32.mrb[6].mxu0  ;;  %693 = vmatprep.subr.bf16.mxu1 %v692_v38  ;;  %v476_v48 = vmax.f32 %v463_v41, 0.0 }
  0xfb   : > { %v467_v43 = vadd.f32 %v466_v42, %v367_v40  ;;  %v468_v44 = vpop.f32.mrb[7].mxu0  ;;  %695 = vmatpush1.bf16.msra.mxu1 %v694_v37 }
  0xfc   : > { %v469_v45 = vadd.f32 %v468_v44, %v367_v40 }
  0xfd   : > { %v477_v47 = vmax.f32 %v467_v43, 0.0 }
  0xfe   : > { %v478_v49 = vmax.f32 %v469_v45, 0.0 }
  0xff   : > { %v698_v50 = vpack.c.bf16 %v477_v47, %v475_v46 }
 0x100   : > { %v696_v51 = vpack.c.bf16 %v478_v49, %v476_v48 }
 0x102   : > { %697 = vmatprep.subr.bf16.mxu1 %v696_v51 }
 0x103   : > { %699 = vmatpush1.bf16.msra.mxu1 %v698_v50 }
 0x106   : > { %686 = vmatmul.mubr.msk.f32.vlgmr.msra.gmra.mrb[0].mxu1 %vm486_vm2, %v479_v52 }
 0x1d9   : > { %v556_v54 = vpop.f32.mrb[0].mxu1 }
 0x1da   : > { %v557_v55 = vadd.f32 %v556_v54, %v484_v53  ;;  %v558_v56 = vpop.f32.mrb[1].mxu1 }
 0x1db   : > { %v559_v57 = vadd.f32 %v558_v56, %v484_v53 }
 0x1dd   : > { %v563_v58 = vcombine.low %v557_v55, %v559_v57 }
 0x1df   : > { %565 = vst [vmem:[%s325_s10] sm:$0x77] %v563_v58 }
 0x1e0 PF: > { %s16_s23 = sadd.s32 1, %s750_s23   ;;  %s867_s21 = smov %s746_s22 }
 0x1e1   : > { %p13_p5 = scmp.ge.s32.totalorder %s16_s23, 4   ;;  %s868_s22 = smov %s870_s24 }
 0x1e3   :  { %15 = sbr.rel (!%p13_p5) target bundleno = 2 (0x2), region = 77 }

</bundles_post_ra>
